<compile_context>
chip_gen: v7x
topology: tpu7x:2x2x1
jax: 0.10.0
libtpu: 0.0.40
codegen_flags: <defaults>
</compile_context>

<pallas_src>
import math
import jax
import jax.numpy as jnp
from jax import lax
from jax.experimental import pallas as pl
from jax.experimental.pallas import tpu as pltpu


def _gelu_exact(x):
    # PyTorch nn.GELU default (approximate='none'): 0.5*x*(1+erf(x/sqrt(2))).
    # NOTE: if profiling at scale shows the VALU saturated on the erf
    # polynomial, jax.nn.gelu(approximate=True) routes through the EUP (tanh)
    # instead -- only if exact-erf numerics can be relaxed.
    return 0.5 * x * (1.0 + lax.erf(x * (1.0 / math.sqrt(2.0))))


def _mlp_kernel(xT_ref, w1T_ref, b1_ref, w2T_ref, b2_ref, oT_ref):
    # Transposed, lane-dense layout: token axis (tm) is the last (lane) dim.
    xT = xT_ref[...]      # (D, tm)
    w1T = w1T_ref[...]    # (HD, D)
    b1 = b1_ref[...]      # (HD, 1)
    w2T = w2T_ref[...]    # (D, HD)
    b2 = b2_ref[...]      # (D, 1)

    # Linear #1 (transposed): (HD, D) @ (D, tm) -> (HD, tm), f32 MXU accumulate.
    hT = jnp.dot(w1T, xT, preferred_element_type=jnp.float32) + b1

    # Exact erf GELU on full 8x128 vregs.
    gT = _gelu_exact(hT)

    # Linear #2 (transposed): (D, HD) @ (HD, tm) -> (D, tm).
    gT = gT.astype(w2T.dtype)   # no-op in the f32 path
    oT = jnp.dot(w2T, gT, preferred_element_type=jnp.float32) + b2

    # Dropout: identity at inference. Lane-dense (tm multiple of 128) store.
    oT_ref[...] = oT.astype(oT_ref.dtype)


def mlp_forward(x, params, *, use_bf16_matmul=False):
    """x: (..., D). Returns same shape. params = (w1, b1, w2, b2)."""
    w1, b1, w2, b2 = params          # (D, HD), (1, HD), (HD, D), (1, D)
    D = x.shape[-1]
    HD = w1.shape[1]
    assert w1.shape == (D, HD) and w2.shape == (HD, D)
    assert b1.shape == (1, HD) and b2.shape == (1, D)

    orig_shape = x.shape
    M = x.size // D

    # Lane-dense transposed layout: tokens on the last (lane) axis.
    xT = x.reshape(M, D).T           # (D, M)
    w1T = w1.T                       # (HD, D)
    b1T = b1.reshape(HD, 1)
    w2T = w2.T                       # (D, HD)
    b2T = b2.reshape(D, 1)

    if use_bf16_matmul:
        # Cast matmul operands once here (not per grid step inside the
        # kernel); accumulation stays f32. Keep False on v5e (no bf16 VPU).
        xT = xT.astype(jnp.bfloat16)
        w1T = w1T.astype(jnp.bfloat16)
        w2T = w2T.astype(jnp.bfloat16)

    # Split tokens across grid steps (megacore) only when each block keeps a
    # large, lane-aligned tile; otherwise one grid step (serial grid on
    # v5e/v6e makes small splits a pure loss).
    nblk = 1
    if M % 2 == 0 and (M // 2) >= 256 and (M // 2) % 128 == 0:
        nblk = 2
    tm = M // nblk

    in_bytes = 2 if use_bf16_matmul else 4
    out_bytes = jnp.dtype(x.dtype).itemsize
    weight_bytes = (HD * D + D * HD) * in_bytes + (HD + D) * 4

    # Single-buffer the resident weights only when they are big enough to
    # matter (constant index maps -> no pipelining needed; halves weight VMEM
    # footprint, the binding constraint on v7x's 64 MiB VMEM).
    weight_pm = {}
    if weight_bytes > 2 * 1024 * 1024:
        weight_pm = dict(pipeline_mode=pl.Buffered(1))

    # Rough VMEM estimate; raise the scoped limit past the 16/32 MiB defaults
    # when the resident-weight design needs it.
    vmem_est = (2 * weight_bytes
                + 2 * D * tm * in_bytes          # x^T blocks (double-buffered)
                + 2 * D * tm * out_bytes         # out^T blocks
                + (HD + D) * tm * 4)             # f32 intermediates
    vmem_limit = None
    if vmem_est > 16 * 1024 * 1024:
        vmem_limit = int(min(2 * vmem_est, 64 * 1024 * 1024))

    oT = pl.pallas_call(
        _mlp_kernel,
        out_shape=jax.ShapeDtypeStruct((D, M), x.dtype),
        grid_spec=pltpu.PrefetchScalarGridSpec(
            num_scalar_prefetch=0,
            grid=(nblk,),
            in_specs=[
                pl.BlockSpec((D, tm), lambda i: (0, i)),                # x^T (token-tiled)
                pl.BlockSpec((HD, D), lambda i: (0, 0), **weight_pm),   # W1^T (resident)
                pl.BlockSpec((HD, 1), lambda i: (0, 0), **weight_pm),   # b1
                pl.BlockSpec((D, HD), lambda i: (0, 0), **weight_pm),   # W2^T (resident)
                pl.BlockSpec((D, 1), lambda i: (0, 0), **weight_pm),    # b2
            ],
            out_specs=pl.BlockSpec((D, tm), lambda i: (0, i)),          # lane-dense stores
        ),
        compiler_params=pltpu.CompilerParams(
            dimension_semantics=("parallel",),
            vmem_limit_bytes=vmem_limit),
    )(xT, w1T, b1T, w2T, b2T)

    return oT.T.reshape(orig_shape)


def init_params(key, embed_dim, mlp_multiplier):
    D = embed_dim
    HD = mlp_multiplier * embed_dim
    ks = jax.random.split(key, 4)
    # Synthetic parameters; layout is already transposed for x @ W (+ b), i.e.
    # w1 = torch Linear1.weight.T, etc.
    w1 = jax.random.normal(ks[0], (D, HD), jnp.float32) * (1.0 / math.sqrt(D))
    b1 = jax.random.normal(ks[1], (1, HD), jnp.float32) * 0.02
    w2 = jax.random.normal(ks[2], (HD, D), jnp.float32) * (1.0 / math.sqrt(HD))
    b2 = jax.random.normal(ks[3], (1, D), jnp.float32) * 0.02
    return (w1, b1, w2, b2)


if __name__ == "__main__":
    embed_dim = 32
    mlp_multiplier = 2
    dropout_level = 0.1  # unused at inference (identity)

    B, S = 2, 64  # M = B*S = 128 tokens -> one grid step, full 128-lane axis

    key = jax.random.PRNGKey(0)
    kx, kp = jax.random.split(key)
    x = jax.random.normal(kx, (B, S, embed_dim), jnp.float32)
    params = init_params(kp, embed_dim, mlp_multiplier)

    out = mlp_forward(x, params)
    jax.block_until_ready(out)
    assert out.shape == (B, S, embed_dim)

    # Pure-JAX reference (f32, exact erf GELU).
    w1, b1, w2, b2 = params
    h = jnp.dot(x.reshape(-1, embed_dim), w1,
                precision=lax.Precision.HIGHEST) + b1
    g = 0.5 * h * (1.0 + lax.erf(h / jnp.sqrt(2.0)))
    ref = (jnp.dot(g, w2, precision=lax.Precision.HIGHEST) + b2
           ).reshape(B, S, embed_dim)
    max_err = float(jnp.max(jnp.abs(out - ref)))
    assert max_err < 1e-3, f"mismatch vs reference: {max_err}"

    print("KERNEL_OK")
</pallas_src>

<mosaic_0001>
module attributes {stable_mosaic.version = 11 : i64} {
  func.func @_mlp_kernel(%arg0: i32, %arg1: memref<32x128xf32, #tpu.memory_space<vmem>>, %arg2: memref<64x32xf32, #tpu.memory_space<vmem>>, %arg3: memref<64x1xf32, #tpu.memory_space<vmem>>, %arg4: memref<32x64xf32, #tpu.memory_space<vmem>>, %arg5: memref<32x1xf32, #tpu.memory_space<vmem>>, %arg6: memref<32x128xf32, #tpu.memory_space<vmem>>) attributes {dimension_semantics = [#tpu.dimension_semantics<parallel>], iteration_bounds = array<i64: 1>, scalar_prefetch = 0 : i64, scratch_operands = 0 : i64, tpu.core_type = #tpu.core_type<tc>, window_params = [{transform_indices = @transform_0, window_bounds = array<i64: 32, 128>}, {pipeline_mode = #tpu.pipeline_mode<synchronous>, transform_indices = @transform_1, window_bounds = array<i64: 64, 32>}, {pipeline_mode = #tpu.pipeline_mode<synchronous>, transform_indices = @transform_2, window_bounds = array<i64: 64, 1>}, {pipeline_mode = #tpu.pipeline_mode<synchronous>, transform_indices = @transform_3, window_bounds = array<i64: 32, 64>}, {pipeline_mode = #tpu.pipeline_mode<synchronous>, transform_indices = @transform_4, window_bounds = array<i64: 32, 1>}, {transform_indices = @transform_5, window_bounds = array<i64: 32, 128>}]} {
    %c0 = arith.constant 0 : index
    %c0_0 = arith.constant 0 : index
    %0 = vector.load %arg1[%c0, %c0_0] : memref<32x128xf32, #tpu.memory_space<vmem>>, vector<32x128xf32>
    %c0_1 = arith.constant 0 : index
    %c0_2 = arith.constant 0 : index
    %1 = vector.load %arg2[%c0_1, %c0_2] : memref<64x32xf32, #tpu.memory_space<vmem>>, vector<64x32xf32>
    %c0_3 = arith.constant 0 : index
    %c0_4 = arith.constant 0 : index
    %2 = vector.load %arg3[%c0_3, %c0_4] : memref<64x1xf32, #tpu.memory_space<vmem>>, vector<64x1xf32>
    %c0_5 = arith.constant 0 : index
    %c0_6 = arith.constant 0 : index
    %3 = vector.load %arg4[%c0_5, %c0_6] : memref<32x64xf32, #tpu.memory_space<vmem>>, vector<32x64xf32>
    %c0_7 = arith.constant 0 : index
    %c0_8 = arith.constant 0 : index
    %4 = vector.load %arg5[%c0_7, %c0_8] : memref<32x1xf32, #tpu.memory_space<vmem>>, vector<32x1xf32>
    %cst = arith.constant dense<0.000000e+00> : vector<64x128xf32>
    %5 = tpu.matmul %1, %0, %cst {dimension_numbers = #tpu.dot_dimension_numbers<[1], [0], [0], [1], [0, 0, 1, 1], [], []>} : vector<64x32xf32>, vector<32x128xf32>, vector<64x128xf32> -> vector<64x128xf32>
    %6 = vector.broadcast %2 : vector<64x1xf32> to vector<64x128xf32>
    %7 = arith.addf %5, %6 : vector<64x128xf32>
    %cst_9 = arith.constant 5.000000e-01 : f32
    %8 = vector.broadcast %cst_9 : f32 to vector<64x128xf32>
    %9 = arith.mulf %8, %7 : vector<64x128xf32>
    %cst_10 = arith.constant 0.707106769 : f32
    %10 = vector.broadcast %cst_10 : f32 to vector<64x128xf32>
    %11 = arith.mulf %7, %10 : vector<64x128xf32>
    %12 = math.erf %11 : vector<64x128xf32>
    %cst_11 = arith.constant 1.000000e+00 : f32
    %13 = vector.broadcast %cst_11 : f32 to vector<64x128xf32>
    %14 = arith.addf %13, %12 : vector<64x128xf32>
    %15 = arith.mulf %9, %14 : vector<64x128xf32>
    %cst_12 = arith.constant dense<0.000000e+00> : vector<32x128xf32>
    %16 = tpu.matmul %3, %15, %cst_12 {dimension_numbers = #tpu.dot_dimension_numbers<[1], [0], [0], [1], [0, 0, 1, 1], [], []>} : vector<32x64xf32>, vector<64x128xf32>, vector<32x128xf32> -> vector<32x128xf32>
    %17 = vector.broadcast %4 : vector<32x1xf32> to vector<32x128xf32>
    %18 = arith.addf %16, %17 : vector<32x128xf32>
    %c0_13 = arith.constant 0 : index
    %c0_14 = arith.constant 0 : index
    %19 = vector.load %arg6[%c0_13, %c0_14] : memref<32x128xf32, #tpu.memory_space<vmem>>, vector<32x128xf32>
    tpu.vector_store %arg6[%c0_13, %c0_14], %18 {strides = array<i32>} : memref<32x128xf32, #tpu.memory_space<vmem>>, vector<32x128xf32>,
    return
  }
  func.func @transform_0(%arg0: i32) -> (i32, i32) {
    %c0_i32 = arith.constant 0 : i32
    %c0_i32_0 = arith.constant 0 : i32
    return %c0_i32, %arg0 : i32, i32
  }
  func.func @transform_1(%arg0: i32) -> (i32, i32) {
    %c0_i32 = arith.constant 0 : i32
    %c0_i32_0 = arith.constant 0 : i32
    %c0_i32_1 = arith.constant 0 : i32
    return %c0_i32, %c0_i32_0 : i32, i32
  }
  func.func @transform_2(%arg0: i32) -> (i32, i32) {
    %c0_i32 = arith.constant 0 : i32
    %c0_i32_0 = arith.constant 0 : i32
    %c0_i32_1 = arith.constant 0 : i32
    return %c0_i32, %c0_i32_0 : i32, i32
  }
  func.func @transform_3(%arg0: i32) -> (i32, i32) {
    %c0_i32 = arith.constant 0 : i32
    %c0_i32_0 = arith.constant 0 : i32
    %c0_i32_1 = arith.constant 0 : i32
    return %c0_i32, %c0_i32_0 : i32, i32
  }
  func.func @transform_4(%arg0: i32) -> (i32, i32) {
    %c0_i32 = arith.constant 0 : i32
    %c0_i32_0 = arith.constant 0 : i32
    %c0_i32_1 = arith.constant 0 : i32
    return %c0_i32, %c0_i32_0 : i32, i32
  }
  func.func @transform_5(%arg0: i32) -> (i32, i32) {
    %c0_i32 = arith.constant 0 : i32
    %c0_i32_0 = arith.constant 0 : i32
    return %c0_i32, %arg0 : i32, i32
  }
}

</mosaic_0001>

<bundles_post_ra>
// kernel: tpu_custom_call.1
= control target key start
LH: loop header
LB: loop body
LE: loop exit
PB: predicated region body
PF: predicated region fallthrough
CT: control target
= control target key end

     0   :  { %vm89_vm0 = vcmask 261120   ;;  %v545_v6 = vmov 0   ;;  %s687_s0 = inlined_call_operand.vmem [shape: f32[32,128], index: 0, kind: input, shape index: {}]   ;;  %s688_s1 = inlined_call_operand.vmem [shape: f32[64,32], index: 1, kind: input, shape index: {}]   ;;  %s689_s2 = inlined_call_operand.vmem [shape: f32[64,1], index: 2, kind: input, shape index: {}]   ;;  %s690_s3 = inlined_call_operand.vmem [shape: f32[32,64], index: 3, kind: input, shape index: {}]   ;;  %s691_s4 = inlined_call_operand.vmem [shape: f32[32,1], index: 4, kind: input, shape index: {}]   ;;  %s692_s5 = inlined_call_operand.hbm [shape: f32[32,128], index: 5, kind: output, shape index: {}]  }
   0x1   :  { %v21_v0 = vld [vmem:[%s687_s0] sm:$0xff]  ;;  %v22_v1 = vld [vmem:[%s687_s0 + $0x8] sm:$0xff]  ;;  %v23_v2 = vld [vmem:[%s687_s0 + $0x10] sm:$0xff]  ;;  %503 = vset.pattern.permute.xlu0 %v545_v6  ;;  %504 = vset.pattern.permute.xlu1 %v545_v6 }
   0x2   :  { %v475_v3 = vpack.c.bf16 %v22_v1, %v21_v0  ;;  %v24_v4 = vld [vmem:[%s687_s0 + $0x18] sm:$0xff]  ;;  %v25_v5 = vld [vmem:[%s688_s1] sm:$0xff]  ;;  %v35_v9 = vld [vmem:[%s689_s2 + $0x10] sm:$0xff] }
   0x3   :  { %v479_v7 = vpack.c.bf16 %v24_v4, %v23_v2  ;;  %441 = vmatprep.mubr.msk.f32.mxu0 %vm89_vm0, %v25_v5  ;;  %v33_v8 = vld [vmem:[%s689_s2] sm:$0xff]  ;;  %61 = vperm.xlu1 %504, %v35_v9   ;;  %v34_v10 = vld [vmem:[%s689_s2 + $0x8] sm:$0xff]  ;;  %v36_v11 = vld [vmem:[%s689_s2 + $0x18] sm:$0xff] }
   0x4   :  { %476 = vmatprep.subr.bf16.mxu0 %v475_v3  ;;  %51 = vperm.xlu0 %503, %v33_v8   ;;  %v26_v12 = vld [vmem:[%s688_s1 + $0x8] sm:$0xff] }
   0x5   :  { %478 = vmatpush3.bf16.msra.mxu0 %v475_v3 }
   0x6   :  { %480 = vmatprep.subr.bf16.mxu0 %v479_v7 }
   0x9   :  { %482 = vmatpush3.bf16.msra.mxu0 %v479_v7 }
   0xa   :  { %10 = vsyncpa [#allocation3], 0  ;;  %v27_v13 = vld [vmem:[%s688_s1 + $0x10] sm:$0xff]  ;;  %56 = vperm.xlu0 %503, %v34_v10   ;;  %66 = vperm.xlu1 %504, %v36_v11   ;;  %v37_v14 = vld [vmem:[%s689_s2 + $0x20] sm:$0xff]  ;;  %vm279_vm1 = vcmask 523264   ;;  %s546_s19 = smov [#allocation2]  }
   0xb   :  { %v38_v15 = vld [vmem:[%s689_s2 + $0x28] sm:$0xff]  ;;  %v28_v16 = vld [vmem:[%s688_s1 + $0x18] sm:$0xff]  ;;  %v29_v17 = vld [vmem:[%s688_s1 + $0x20] sm:$0xff]  ;;  %s386_s20 = sshll.u32 %s546_s19, 4  ;;  %s387_s20 = int_to_ptr.vmem [resolvable:$true] %s386_s20 }
   0xc   :  { %442 = vmatmul.mubr.msk.f32.vlgmr.msra.gmra.mrb[0].mxu0 %vm89_vm0, %v26_v12  ;;  %v39_v18 = vld [vmem:[%s689_s2 + $0x30] sm:$0xff]  ;;  %v40_v19 = vld [vmem:[%s689_s2 + $0x38] sm:$0xff]  ;;  %v30_v20 = vld [vmem:[%s688_s1 + $0x28] sm:$0xff]  ;;  %p526_p1 = scmp.lt.s32.totalorder %s387_s20, %s387_s20 }
   0xd   :  { %444 = vmatprep.mubr.msk.f32.mxu0 %vm89_vm0, %v27_v13  ;;  %v31_v21 = vld [vmem:[%s688_s1 + $0x30] sm:$0xff]  ;;  %v45_v22 = vld [vmem:[%s691_s4] sm:$0xff]  ;;  %v46_v23 = vld [vmem:[%s691_s4 + $0x8] sm:$0xff] }
   0xe   :  { %71 = vperm.xlu0 %503, %v37_v14   ;;  %76 = vperm.xlu1 %504, %v38_v15   ;;  %v32_v24 = vld [vmem:[%s688_s1 + $0x38] sm:$0xff]  ;;  %v47_v25 = vld [vmem:[%s691_s4 + $0x10] sm:$0xff]  ;;  %v41_v27 = vld [vmem:[%s690_s3] sm:$0xff] }
   0xf   :  { %v48_v26 = vld [vmem:[%s691_s4 + $0x18] sm:$0xff]  ;;  %469 = vmatprep.mubr.msk.f32.mxu1 %vm279_vm1, %v41_v27 }
  0x10   :  { %445 = vmatmul.mubr.msk.f32.gmra.mrb[2].mxu0 %vm89_vm0, %v28_v16 }
  0x11   :  { %447 = vmatprep.mubr.msk.f32.mxu0 %vm89_vm0, %v29_v17 }
  0x12   :  { %81 = vperm.xlu0 %503, %v39_v18   ;;  %86 = vperm.xlu1 %504, %v40_v19  }
  0x14   :  { %448 = vmatmul.mubr.msk.f32.gmra.mrb[4].mxu0 %vm89_vm0, %v30_v20 }
  0x15   :  { %450 = vmatprep.mubr.msk.f32.mxu0 %vm89_vm0, %v31_v21 }
  0x16   :  { %261 = vperm.xlu0 %503, %v45_v22   ;;  %266 = vperm.xlu1 %504, %v46_v23  }
  0x18   :  { %451 = vmatmul.mubr.msk.f32.gmra.mrb[6].mxu0 %vm89_vm0, %v32_v24 }
  0x1a   :  { %271 = vperm.xlu0 %503, %v47_v25   ;;  %276 = vperm.xlu1 %504, %v48_v26  }
  0x82   :  { %v62_v29 = vpop.permute.xlu1 %61 }
  0x83   :  { %v52_v28 = vpop.permute.xlu0 %51 }
  0x89   :  { %v57_v30 = vpop.permute.xlu0 %56  ;;  %v67_v31 = vpop.permute.xlu1 %66 }
  0x8d   :  { %v77_v41 = vpop.permute.xlu1 %76  ;;  %v72_v43 = vpop.permute.xlu0 %71 }
  0x91   :  { %v87_v51 = vpop.permute.xlu1 %86  ;;  %v82_v54 = vpop.permute.xlu0 %81 }
  0xdf   :  { %v443_v32 = vpop.f32.mrb[0].mxu0 }
  0xe0   :  { %v186_v33 = vadd.f32 %v443_v32, %v57_v30  ;;  %v180_v34 = vpop.f32.mrb[1].mxu0  ;;  %v42_v32 = vld [vmem:[%s690_s3 + $0x8] sm:$0xff] }
  0xe1   :  { %v181_v35 = vadd.f32 %v180_v34, %v52_v28  ;;  %v44_v34 = vld [vmem:[%s690_s3 + $0x18] sm:$0xff] }
  0xe2   :  { %v228_v36 = vmul.f32 0.70710677, %v186_v33  ;;  %v220_v61 = vmul.f32 0.5, %v186_v33  ;;  %v43_v33 = vld [vmem:[%s690_s3 + $0x10] sm:$0xff]  ;;  %s521_s3 = scalar_lea.vmem %s387_s20, 512 }
  0xe3   :  { %v227_v37 = vmul.f32 0.70710677, %v181_v35  ;;  %v446_v38 = vpop.f32.mrb[2].mxu0  ;;  %v219_v0 = vmul.f32 0.5, %v181_v35  ;;  %v267_v35 = vpop.permute.xlu1 %266  ;;  %p522_p0 = scmp.ne.s32.totalorder %s387_s20, %s521_s3  ;;  %p527_p2 = scmp.lt.s32.totalorder %s521_s3, %s521_s3 }
  0xe4   :  { %505 = verf.f32 %v228_v36  ;;  %v196_v39 = vadd.f32 %v446_v38, %v67_v31  ;;  %v190_v40 = vpop.f32.mrb[3].mxu0  ;;  %v262_v36 = vpop.permute.xlu0 %261 }
  0xe5   :  { %507 = verf.f32 %v227_v37  ;;  %v191_v42 = vadd.f32 %v190_v40, %v62_v29  ;;  %p528_p3 = por %p527_p2, %p526_p1 }
  0xe6   :  { %v230_v44 = vmul.f32 0.70710677, %v196_v39  ;;  %v222_v6 = vmul.f32 0.5, %v196_v39 }
  0xe7   :  { %v229_v45 = vmul.f32 0.70710677, %v191_v42  ;;  %v449_v46 = vpop.f32.mrb[4].mxu0  ;;  %v221_v8 = vmul.f32 0.5, %v191_v42  ;;  %p529_p4 = pnand %p528_p3, %p522_p0 }
  0xe8   :  { %509 = verf.f32 %v230_v44  ;;  %v206_v47 = vadd.f32 %v449_v46, %v77_v41  ;;  %v200_v48 = vpop.f32.mrb[5].mxu0  ;;  %v277_v41 = vpop.permute.xlu1 %276 }
  0xe9   :  { %511 = verf.f32 %v229_v45  ;;  %v201_v49 = vadd.f32 %v200_v48, %v72_v43  ;;  %v272_v43 = vpop.permute.xlu0 %271 }
  0xea   :  { %v232_v50 = vmul.f32 0.70710677, %v206_v47  ;;  %v224_v15 = vmul.f32 0.5, %v206_v47 }
  0xeb   :  { %v231_v52 = vmul.f32 0.70710677, %v201_v49  ;;  %v452_v53 = vpop.f32.mrb[6].mxu0  ;;  %v223_v17 = vmul.f32 0.5, %v201_v49 }
  0xec   :  { %513 = verf.f32 %v232_v50  ;;  %v216_v55 = vadd.f32 %v452_v53, %v87_v51  ;;  %v210_v56 = vpop.f32.mrb[7].mxu0 }
  0xed   :  { %515 = verf.f32 %v231_v52  ;;  %v211_v57 = vadd.f32 %v210_v56, %v82_v54 }
  0xee   :  { %v506_v58 = vpop.eup %505  ;;  %v234_v59 = vmul.f32 0.70710677, %v216_v55  ;;  %v226_v24 = vmul.f32 0.5, %v216_v55 }
  0xef   :  { %v508_v60 = vpop.eup %507  ;;  %v233_v62 = vmul.f32 0.70710677, %v211_v57  ;;  %v244_v63 = vadd.f32 1.0, %v506_v58  ;;  %v225_v26 = vmul.f32 0.5, %v211_v57 }
  0xf0   :  { %517 = verf.f32 %v234_v59  ;;  %v243_v1 = vadd.f32 1.0, %v508_v60 }
  0xf1   :  { %519 = verf.f32 %v233_v62  ;;  %v252_v2 = vmul.f32 %v244_v63, %v220_v61 }
  0xf2   :  { %v510_v3 = vpop.eup %509  ;;  %v251_v4 = vmul.f32 %v243_v1, %v219_v0 }
  0xf3   :  { %v512_v5 = vpop.eup %511  ;;  %v246_v7 = vadd.f32 1.0, %v510_v3 }
  0xf4   :  { %v245_v9 = vadd.f32 1.0, %v512_v5  ;;  %v483_v10 = vpack.c.bf16 %v252_v2, %v251_v4 }
  0xf5   :  { %v254_v11 = vmul.f32 %v246_v7, %v222_v6 }
  0xf6   :  { %v514_v12 = vpop.eup %513  ;;  %v253_v13 = vmul.f32 %v245_v9, %v221_v8  ;;  %484 = vmatprep.subr.bf16.mxu1 %v483_v10 }
  0xf7   :  { %v516_v14 = vpop.eup %515  ;;  %v248_v16 = vadd.f32 1.0, %v514_v12  ;;  %486 = vmatpush3.bf16.msra.mxu1 %v483_v10 }
  0xf8   :  { %v247_v18 = vadd.f32 1.0, %v516_v14  ;;  %v487_v19 = vpack.c.bf16 %v254_v11, %v253_v13 }
  0xf9   :  { %v256_v20 = vmul.f32 %v248_v16, %v224_v15 }
  0xfa   :  { %v518_v21 = vpop.eup %517  ;;  %v255_v22 = vmul.f32 %v247_v18, %v223_v17  ;;  %488 = vmatprep.subr.bf16.mxu1 %v487_v19 }
  0xfb   :  { %v520_v23 = vpop.eup %519  ;;  %v250_v25 = vadd.f32 1.0, %v518_v21  ;;  %490 = vmatpush3.bf16.msra.mxu1 %v487_v19 }
  0xfc   :  { %v249_v27 = vadd.f32 1.0, %v520_v23  ;;  %v491_v28 = vpack.c.bf16 %v256_v20, %v255_v22 }
  0xfd   :  { %v258_v29 = vmul.f32 %v250_v25, %v226_v24 }
  0xfe   :  { %v257_v30 = vmul.f32 %v249_v27, %v225_v26  ;;  %492 = vmatprep.subr.bf16.mxu1 %v491_v28 }
  0xff   :  { %494 = vmatpush3.bf16.msra.mxu1 %v491_v28 }
 0x100   :  { %v495_v31 = vpack.c.bf16 %v258_v29, %v257_v30 }
 0x102   :  { %496 = vmatprep.subr.bf16.mxu1 %v495_v31 }
 0x103   :  { %498 = vmatpush3.bf16.msra.mxu1 %v495_v31 }
 0x106   :  { %470 = vmatmul.mubr.msk.f32.vlgmr.msra.gmra.mrb[0].mxu1 %vm279_vm1, %v42_v32 }
 0x107   :  { %472 = vmatprep.mubr.msk.f32.mxu1 %vm279_vm1, %v43_v33 }
 0x10a   :  { %473 = vmatmul.mubr.msk.f32.gmra.mrb[2].mxu1 %vm279_vm1, %v44_v34 }
 0x1d9   :  { %v471_v37 = vpop.f32.mrb[0].mxu1 }
 0x1da   :  { %v364_v38 = vadd.f32 %v471_v37, %v267_v35  ;;  %v358_v39 = vpop.f32.mrb[1].mxu1 }
 0x1db   :  { %v359_v40 = vadd.f32 %v358_v39, %v262_v36 }
 0x1dc   :  { %378 = vst [vmem:[#allocation2 + $0x8] sm:$0xff] %v364_v38 }
 0x1dd   :  { %377 = vst [vmem:[#allocation2] sm:$0xff] %v359_v40  ;;  %v474_v42 = vpop.f32.mrb[2].mxu1 }
 0x1de   :  { %v374_v44 = vadd.f32 %v474_v42, %v277_v41  ;;  %v368_v45 = vpop.f32.mrb[3].mxu1 }
 0x1df   :  { %v369_v46 = vadd.f32 %v368_v45, %v272_v43 }
 0x1e0   :  { %380 = vst [vmem:[#allocation2 + $0x18] sm:$0xff] %v374_v44 }
 0x1e1   :  { %379 = vst [vmem:[#allocation2 + $0x10] sm:$0xff] %v369_v46 }
 0x1e2   :  { %532 = shalt.err (!%p529_p4)
}
 0x1e3   :  { %s533_s23 = scalar_lea.hbm %s692_s5, 512 }
 0x1e4   :  { %p534_p5 = scmp.ne.s32.totalorder %s692_s5, %s533_s23  ;;  %p537_p6 = scmp.lt.u32.totalorder %s533_s23, %s692_s5 }
 0x1e6   :  { %p539_p7 = pnand %p537_p6, %p534_p5 }
 0x1e8   :  { %542 = shalt.err (!%p539_p7)
}
 0x1e9   :  { %s547_s28 = smov 128   ;;  %s548_s29 = smov 8  }
 0x1ea   :  { %392 = dma.vmem_to_hbm [thread:$0]  %s387_s20, 512, %s692_s5, [#allocation3], %s547_s28, %s547_s28, %s548_s29  }
 0x1eb   :  { %543 = dma.done.wait [#allocation3], 512  }
 0x1ec   :  { %544 = vsyncadd [#allocation3], 4294966784 }
 0x1ed   :  { %396 = vsyncpa [#allocation3], 1 }

</bundles_post_ra>
